<compile_context>
chip_gen: v7x
topology: tpu7x:2x2x1
jax: 0.10.0
libtpu: 0.0.40
codegen_flags: <defaults>
</compile_context>

<pallas_src>
import functools

import jax
import jax.numpy as jnp
from jax.experimental import pallas as pl
from jax.experimental.pallas import tpu as pltpu

LANE = 128  # lane width; last dims padded to this for dense stores


def _round_up(x, m):
    return (x + m - 1) // m * m


# -----------------------------------------------------------------------------
# Fused kernel: CNN encode (both sentences, all windows) + interaction + MLP
# -----------------------------------------------------------------------------
def _nlinet_kernel(emb_ref, mask_ref, cw_ref, cb_ref,
                   w1_ref, b1_ref, w2_ref, b2_ref, o_ref):
    E = emb_ref.shape[-1]
    L = mask_ref.shape[0]
    bt = emb_ref.shape[1] // L          # batch rows in this tile
    k_max = cw_ref.shape[0] // E        # largest conv window size
    rows = 2 * bt * L                   # both sentences share the MXU M axis

    emb2d = emb_ref[...].reshape(rows, E)              # bf16 (2*bt*L, E)

    # K-packed conv operand: column block k is the time-shift-by-k copy of the
    # embeddings.  Wrapped rows only ever feed time steps the mask zeroes out.
    cols = [emb2d]
    for k in range(1, k_max):
        cols.append(jnp.concatenate([emb2d[k:], emb2d[:k]], axis=0))
    x_pack = jnp.concatenate(cols, axis=-1)            # (rows, k_max*E) bf16

    # ONE MXU matmul = every window's Conv1d for both sentences; lane block
    # [i*H:(i+1)*H] of the result is window i's conv output at each time step.
    conv = jnp.dot(x_pack, cw_ref[...], preferred_element_type=jnp.float32)
    conv = conv.reshape(2 * bt, L, -1)                 # (2*bt, L, NPACK) f32
    conv = jnp.maximum(conv + cb_ref[...][:, None, :], 0.0)
    conv = conv * mask_ref[...][None, :, :]            # zero invalid time steps
    pooled = jnp.max(conv, axis=1)                     # (2*bt, NPACK) f32

    u, v = pooled[:bt], pooled[bt:]
    # lane-aligned feature concat (each block is 128-lane aligned -> cheap)
    feats = jnp.concatenate([u, v, jnp.abs(u - v), u * v], axis=-1)

    h = jnp.dot(feats.astype(jnp.bfloat16), w1_ref[...],
                preferred_element_type=jnp.float32) + b1_ref[...]
    h = jnp.tanh(h)
    logits = jnp.dot(h.astype(jnp.bfloat16), w2_ref[...],
                     preferred_element_type=jnp.float32) + b2_ref[...]

    # softmax; padded classes have -1e30 bias -> exp underflows to exactly 0
    m = jnp.max(logits, axis=-1, keepdims=True)
    e = jnp.exp(logits - m)
    o_ref[...] = e / jnp.sum(e, axis=-1, keepdims=True)   # exact normalization


# -----------------------------------------------------------------------------
# Wrapper: bf16 gather, batch padding/tiling, pallas_call
# -----------------------------------------------------------------------------
def nli_net_forward(kparams, s1_tokens, s2_tokens, *, n_classes, b_tile=128):
    """s*_tokens: (L, B) int32 token ids (seq-first, like PyTorch)."""
    L, B = s1_tokens.shape
    bt = min(b_tile, _round_up(B, 8))          # tile rows, multiple of 8
    b_pad = _round_up(B, bt)

    tok = jnp.stack([s1_tokens.T, s2_tokens.T], axis=0)      # (2, B, L)
    if b_pad != B:
        tok = jnp.pad(tok, ((0, 0), (0, b_pad - B), (0, 0)))
    # eval-mode embed dropout = identity; gather straight to bf16
    emb = jnp.take(kparams["embed"], tok, axis=0)            # (2, b_pad, L, E)
    E = emb.shape[-1]
    emb = emb.reshape(2, b_pad * L, E)

    mask, cw, cb = kparams["mask"], kparams["conv_w"], kparams["conv_b"]
    w1, b1 = kparams["fc1_w"], kparams["fc1_b"]
    w2, b2 = kparams["fc2_w"], kparams["fc2_b"]
    cpad = b2.shape[-1]

    out_pad = pl.pallas_call(
        _nlinet_kernel,
        grid=(b_pad // bt,),
        in_specs=[
            pl.BlockSpec((2, bt * L, E), lambda b: (0, b, 0)),
            pl.BlockSpec(mask.shape, lambda b: (0, 0)),
            pl.BlockSpec(cw.shape, lambda b: (0, 0)),
            pl.BlockSpec(cb.shape, lambda b: (0, 0)),
            pl.BlockSpec(w1.shape, lambda b: (0, 0)),
            pl.BlockSpec(b1.shape, lambda b: (0, 0)),
            pl.BlockSpec(w2.shape, lambda b: (0, 0)),
            pl.BlockSpec(b2.shape, lambda b: (0, 0)),
        ],
        out_specs=pl.BlockSpec((bt, cpad), lambda b: (b, 0)),
        out_shape=jax.ShapeDtypeStruct((b_pad, cpad), jnp.float32),
        compiler_params=pltpu.CompilerParams(
            dimension_semantics=("parallel",)),
    )(emb, mask, cw, cb, w1, b1, w2, b2)
    return out_pad[:B, :n_classes]


# -----------------------------------------------------------------------------
# Parameters: PyTorch-layout (unpadded f32) + packed/padded kernel layout
# -----------------------------------------------------------------------------
def make_params(key, vocab_size, embed_size, enc_hidden_dim, window_sizes,
                fc_dim, n_classes):
    keys = jax.random.split(key, 3 + 2 * len(window_sizes))
    params = {}
    params["embed"] = jax.random.normal(
        keys[0], (vocab_size, embed_size), jnp.float32) * 0.1
    params["conv"] = []
    for i, w in enumerate(window_sizes):
        kw, kb = keys[1 + 2 * i], keys[2 + 2 * i]
        params["conv"].append((
            jax.random.normal(kw, (w * embed_size, enc_hidden_dim),
                              jnp.float32) * 0.1,
            jax.random.normal(kb, (1, enc_hidden_dim), jnp.float32) * 0.1,
        ))
    inputdim = 4 * enc_hidden_dim * len(window_sizes)
    kc = jax.random.split(keys[-1], 4)
    params["fc1_w"] = jax.random.normal(kc[0], (inputdim, fc_dim),
                                        jnp.float32) * 0.1
    params["fc1_b"] = jax.random.normal(kc[1], (1, fc_dim), jnp.float32) * 0.1
    params["fc2_w"] = jax.random.normal(kc[2], (fc_dim, n_classes),
                                        jnp.float32) * 0.1
    params["fc2_b"] = jax.random.normal(kc[3], (1, n_classes),
                                        jnp.float32) * 0.1
    return params


def prepare_kernel_params(params, enc_hidden_dim, window_sizes, fc_dim,
                          n_classes, seq_len):
    """Pack conv weights along K (shifts) + N (windows), fc1 along the padded
    feature lanes; pad lane dims to 128; cast MXU weights / embed table bf16."""
    H, F, C, L = enc_hidden_dim, fc_dim, n_classes, seq_len
    nw = len(window_sizes)
    E = params["embed"].shape[1]
    k_max = max(window_sizes)
    npack = _round_up(nw * H, LANE)
    fpad = _round_up(F, LANE)
    cpad = _round_up(C, LANE)

    kp = {"embed": params["embed"].astype(jnp.bfloat16)}

    cw = jnp.zeros((k_max * E, npack), jnp.float32)
    cb = jnp.zeros((1, npack), jnp.float32)
    mask = jnp.zeros((L, npack), jnp.float32)
    for i, win in enumerate(window_sizes):
        w_mat, b_vec = params["conv"][i]           # (win*E, H), (1, H)
        cw = cw.at[:win * E, i * H:(i + 1) * H].set(w_mat)
        cb = cb.at[0, i * H:(i + 1) * H].set(b_vec[0])
        mask = mask.at[:L - win + 1, i * H:(i + 1) * H].set(1.0)
    kp["conv_w"] = cw.astype(jnp.bfloat16)
    kp["conv_b"] = cb
    kp["mask"] = mask

    # fc1: rows re-indexed from the tight 4*nw*H feature layout (PyTorch
    # cat(u, v, |u-v|, u*v), u = cat over windows) to the lane-aligned 4*npack
    # layout produced in-kernel.
    w1 = jnp.zeros((4 * npack, fpad), jnp.float32)
    for j in range(4):
        for i in range(nw):
            src = params["fc1_w"][(j * nw + i) * H:(j * nw + i + 1) * H, :]
            w1 = w1.at[j * npack + i * H:j * npack + (i + 1) * H, :F].set(src)
    kp["fc1_w"] = w1.astype(jnp.bfloat16)
    kp["fc1_b"] = jnp.zeros((1, fpad), jnp.float32).at[:, :F].set(
        params["fc1_b"])
    kp["fc2_w"] = jnp.zeros((fpad, cpad), jnp.float32).at[:F, :C].set(
        params["fc2_w"]).astype(jnp.bfloat16)
    # padded class logits get -1e30 bias -> exactly zero softmax probability
    kp["fc2_b"] = jnp.full((1, cpad), -1e30, jnp.float32).at[:, :C].set(
        params["fc2_b"])
    return kp


# -----------------------------------------------------------------------------
# Plain-JAX reference (unpadded, f32) with identical forward semantics
# -----------------------------------------------------------------------------
def reference_forward(params, s1_tokens, s2_tokens):
    emb1 = jnp.take(params["embed"], s1_tokens.T, axis=0)    # (B, L, E)
    emb2 = jnp.take(params["embed"], s2_tokens.T, axis=0)

    def enc(emb):
        B, L, E = emb.shape
        outs = []
        for (w_mat, b_vec) in params["conv"]:
            window = w_mat.shape[0] // E
            T = L - window + 1
            patches = jnp.concatenate(
                [emb[:, t:t + T, :] for t in range(window)], axis=-1)
            conv = jnp.einsum("btp,ph->bth", patches, w_mat) + b_vec[None, :, :]
            outs.append(jnp.max(jnp.maximum(conv, 0.0), axis=1))
        return jnp.concatenate(outs, axis=1)

    u, v = enc(emb1), enc(emb2)
    feats = jnp.concatenate([u, v, jnp.abs(u - v), u * v], axis=1)
    h = jnp.tanh(feats @ params["fc1_w"] + params["fc1_b"])
    logits = h @ params["fc2_w"] + params["fc2_b"]
    return jax.nn.softmax(logits, axis=-1)


# -----------------------------------------------------------------------------
if __name__ == "__main__":
    vocab_size, embed_size = 50, 32
    enc_hidden_dim = 16
    window_sizes = (3, 4, 5)
    fc_dim, n_classes = 32, 3
    B, L = 2, 8

    key = jax.random.PRNGKey(0)
    kp_key, k1, k2 = jax.random.split(key, 3)
    params = make_params(kp_key, vocab_size, embed_size, enc_hidden_dim,
                         window_sizes, fc_dim, n_classes)
    kparams = prepare_kernel_params(params, enc_hidden_dim, window_sizes,
                                    fc_dim, n_classes, L)

    s1_tokens = jax.random.randint(k1, (L, B), 0, vocab_size, jnp.int32)
    s2_tokens = jax.random.randint(k2, (L, B), 0, vocab_size, jnp.int32)

    fwd = jax.jit(functools.partial(nli_net_forward, n_classes=n_classes))
    out = fwd(kparams, s1_tokens, s2_tokens)
    out = jax.block_until_ready(out)

    ref = reference_forward(params, s1_tokens, s2_tokens)
    assert out.shape == (B, n_classes)
    assert bool(jnp.allclose(jnp.sum(out, axis=-1), 1.0, atol=1e-4))
    assert bool(jnp.allclose(out, ref, atol=2e-2))
    print("KERNEL_OK")
</pallas_src>

<mosaic_0001>
module attributes {stable_mosaic.version = 11 : i64} {
  func.func @_nlinet_kernel(%arg0: i32, %arg1: memref<2x64x32xbf16, #tpu.memory_space<vmem>>, %arg2: memref<8x128xf32, #tpu.memory_space<vmem>>, %arg3: memref<160x128xbf16, #tpu.memory_space<vmem>>, %arg4: memref<1x128xf32, #tpu.memory_space<vmem>>, %arg5: memref<512x128xbf16, #tpu.memory_space<vmem>>, %arg6: memref<1x128xf32, #tpu.memory_space<vmem>>, %arg7: memref<128x128xbf16, #tpu.memory_space<vmem>>, %arg8: memref<1x128xf32, #tpu.memory_space<vmem>>, %arg9: memref<8x128xf32, #tpu.memory_space<vmem>>) attributes {dimension_semantics = [#tpu.dimension_semantics<parallel>], iteration_bounds = array<i64: 1>, scalar_prefetch = 0 : i64, scratch_operands = 0 : i64, tpu.core_type = #tpu.core_type<tc>, window_params = [{transform_indices = @transform_0, window_bounds = array<i64: 2, 64, 32>}, {pipeline_mode = #tpu.pipeline_mode<synchronous>, transform_indices = @transform_1, window_bounds = array<i64: 8, 128>}, {pipeline_mode = #tpu.pipeline_mode<synchronous>, transform_indices = @transform_2, window_bounds = array<i64: 160, 128>}, {pipeline_mode = #tpu.pipeline_mode<synchronous>, transform_indices = @transform_3, window_bounds = array<i64: 1, 128>}, {pipeline_mode = #tpu.pipeline_mode<synchronous>, transform_indices = @transform_4, window_bounds = array<i64: 512, 128>}, {pipeline_mode = #tpu.pipeline_mode<synchronous>, transform_indices = @transform_5, window_bounds = array<i64: 1, 128>}, {pipeline_mode = #tpu.pipeline_mode<synchronous>, transform_indices = @transform_6, window_bounds = array<i64: 128, 128>}, {pipeline_mode = #tpu.pipeline_mode<synchronous>, transform_indices = @transform_7, window_bounds = array<i64: 1, 128>}, {transform_indices = @transform_8, window_bounds = array<i64: 8, 128>}]} {
    %c0 = arith.constant 0 : index
    %c0_0 = arith.constant 0 : index
    %c0_1 = arith.constant 0 : index
    %0 = vector.load %arg1[%c0, %c0_0, %c0_1] : memref<2x64x32xbf16, #tpu.memory_space<vmem>>, vector<2x64x32xbf16>
    %1 = vector.shape_cast %0 : vector<2x64x32xbf16> to vector<128x32xbf16>
    %2 = vector.extract_strided_slice %1 {offsets = [1, 0], sizes = [127, 32], strides = [1, 1]} : vector<128x32xbf16> to vector<127x32xbf16>
    %3 = vector.extract_strided_slice %1 {offsets = [0, 0], sizes = [1, 32], strides = [1, 1]} : vector<128x32xbf16> to vector<1x32xbf16>
    %4 = tpu.concatenate %2, %3 in 0 : vector<127x32xbf16>, vector<1x32xbf16> -> vector<128x32xbf16>
    %5 = vector.extract_strided_slice %1 {offsets = [2, 0], sizes = [126, 32], strides = [1, 1]} : vector<128x32xbf16> to vector<126x32xbf16>
    %6 = vector.extract_strided_slice %1 {offsets = [0, 0], sizes = [2, 32], strides = [1, 1]} : vector<128x32xbf16> to vector<2x32xbf16>
    %7 = tpu.concatenate %5, %6 in 0 : vector<126x32xbf16>, vector<2x32xbf16> -> vector<128x32xbf16>
    %8 = vector.extract_strided_slice %1 {offsets = [3, 0], sizes = [125, 32], strides = [1, 1]} : vector<128x32xbf16> to vector<125x32xbf16>
    %9 = vector.extract_strided_slice %1 {offsets = [0, 0], sizes = [3, 32], strides = [1, 1]} : vector<128x32xbf16> to vector<3x32xbf16>
    %10 = tpu.concatenate %8, %9 in 0 : vector<125x32xbf16>, vector<3x32xbf16> -> vector<128x32xbf16>
    %11 = vector.extract_strided_slice %1 {offsets = [4, 0], sizes = [124, 32], strides = [1, 1]} : vector<128x32xbf16> to vector<124x32xbf16>
    %12 = vector.extract_strided_slice %1 {offsets = [0, 0], sizes = [4, 32], strides = [1, 1]} : vector<128x32xbf16> to vector<4x32xbf16>
    %13 = tpu.concatenate %11, %12 in 0 : vector<124x32xbf16>, vector<4x32xbf16> -> vector<128x32xbf16>
    %14 = tpu.concatenate %1, %4, %7, %10, %13 in 1 : vector<128x32xbf16>, vector<128x32xbf16>, vector<128x32xbf16>, vector<128x32xbf16>, vector<128x32xbf16> -> vector<128x160xbf16>
    %c0_2 = arith.constant 0 : index
    %c0_3 = arith.constant 0 : index
    %15 = vector.load %arg3[%c0_2, %c0_3] : memref<160x128xbf16, #tpu.memory_space<vmem>>, vector<160x128xbf16>
    %cst = arith.constant dense<0.000000e+00> : vector<128x128xf32>
    %16 = tpu.matmul %14, %15, %cst {dimension_numbers = #tpu.dot_dimension_numbers<[1], [0], [0], [1], [0, 0, 1, 1], [], []>} : vector<128x160xbf16>, vector<160x128xbf16>, vector<128x128xf32> -> vector<128x128xf32>
    %17 = vector.shape_cast %16 : vector<128x128xf32> to vector<16x8x128xf32>
    %c0_4 = arith.constant 0 : index
    %c0_5 = arith.constant 0 : index
    %18 = vector.load %arg4[%c0_4, %c0_5] : memref<1x128xf32, #tpu.memory_space<vmem>>, vector<1x128xf32>
    %19 = vector.shape_cast %18 : vector<1x128xf32> to vector<1x1x128xf32>
    %20 = vector.broadcast %19 : vector<1x1x128xf32> to vector<16x8x128xf32>
    %21 = arith.addf %17, %20 : vector<16x8x128xf32>
    %cst_6 = arith.constant 0.000000e+00 : f32
    %22 = vector.broadcast %cst_6 : f32 to vector<16x8x128xf32>
    %23 = arith.maximumf %21, %22 : vector<16x8x128xf32>
    %c0_7 = arith.constant 0 : index
    %c0_8 = arith.constant 0 : index
    %24 = vector.load %arg2[%c0_7, %c0_8] : memref<8x128xf32, #tpu.memory_space<vmem>>, vector<8x128xf32>
    %25 = vector.shape_cast %24 : vector<8x128xf32> to vector<1x8x128xf32>
    %26 = vector.broadcast %25 : vector<1x8x128xf32> to vector<16x8x128xf32>
    %27 = arith.mulf %23, %26 : vector<16x8x128xf32>
    %cst_9 = arith.constant dense<0xFF800000> : vector<16x128xf32>
    %28 = vector.multi_reduction <maximumf>, %27, %cst_9 [1] : vector<16x8x128xf32> to vector<16x128xf32>
    %29 = vector.extract_strided_slice %28 {offsets = [0, 0], sizes = [8, 128], strides = [1, 1]} : vector<16x128xf32> to vector<8x128xf32>
    %30 = vector.extract_strided_slice %28 {offsets = [8, 0], sizes = [8, 128], strides = [1, 1]} : vector<16x128xf32> to vector<8x128xf32>
    %31 = arith.subf %29, %30 : vector<8x128xf32>
    %32 = math.absf %31 : vector<8x128xf32>
    %33 = arith.mulf %29, %30 : vector<8x128xf32>
    %34 = tpu.concatenate %29, %30, %32, %33 in 1 : vector<8x128xf32>, vector<8x128xf32>, vector<8x128xf32>, vector<8x128xf32> -> vector<8x512xf32>
    %35 = arith.truncf %34 : vector<8x512xf32> to vector<8x512xbf16>
    %c0_10 = arith.constant 0 : index
    %c0_11 = arith.constant 0 : index
    %36 = vector.load %arg5[%c0_10, %c0_11] : memref<512x128xbf16, #tpu.memory_space<vmem>>, vector<512x128xbf16>
    %cst_12 = arith.constant dense<0.000000e+00> : vector<8x128xf32>
    %37 = tpu.matmul %35, %36, %cst_12 {dimension_numbers = #tpu.dot_dimension_numbers<[1], [0], [0], [1], [0, 0, 1, 1], [], []>} : vector<8x512xbf16>, vector<512x128xbf16>, vector<8x128xf32> -> vector<8x128xf32>
    %c0_13 = arith.constant 0 : index
    %c0_14 = arith.constant 0 : index
    %38 = vector.load %arg6[%c0_13, %c0_14] : memref<1x128xf32, #tpu.memory_space<vmem>>, vector<1x128xf32>
    %39 = vector.broadcast %38 : vector<1x128xf32> to vector<8x128xf32>
    %40 = arith.addf %37, %39 : vector<8x128xf32>
    %41 = math.tanh %40 : vector<8x128xf32>
    %42 = arith.truncf %41 : vector<8x128xf32> to vector<8x128xbf16>
    %c0_15 = arith.constant 0 : index
    %c0_16 = arith.constant 0 : index
    %43 = vector.load %arg7[%c0_15, %c0_16] : memref<128x128xbf16, #tpu.memory_space<vmem>>, vector<128x128xbf16>
    %cst_17 = arith.constant dense<0.000000e+00> : vector<8x128xf32>
    %44 = tpu.matmul %42, %43, %cst_17 {dimension_numbers = #tpu.dot_dimension_numbers<[1], [0], [0], [1], [0, 0, 1, 1], [], []>} : vector<8x128xbf16>, vector<128x128xbf16>, vector<8x128xf32> -> vector<8x128xf32>
    %c0_18 = arith.constant 0 : index
    %c0_19 = arith.constant 0 : index
    %45 = vector.load %arg8[%c0_18, %c0_19] : memref<1x128xf32, #tpu.memory_space<vmem>>, vector<1x128xf32>
    %46 = vector.broadcast %45 : vector<1x128xf32> to vector<8x128xf32>
    %47 = arith.addf %44, %46 : vector<8x128xf32>
    %cst_20 = arith.constant dense<0xFF800000> : vector<8xf32>
    %48 = vector.multi_reduction <maximumf>, %47, %cst_20 [1] : vector<8x128xf32> to vector<8xf32>
    %49 = vector.shape_cast %48 : vector<8xf32> to vector<8x1xf32>
    %50 = vector.broadcast %49 : vector<8x1xf32> to vector<8x128xf32>
    %51 = arith.subf %47, %50 : vector<8x128xf32>
    %52 = math.exp %51 : vector<8x128xf32>
    %cst_21 = arith.constant dense<0.000000e+00> : vector<8xf32>
    %53 = vector.multi_reduction <add>, %52, %cst_21 [1] : vector<8x128xf32> to vector<8xf32>
    %54 = vector.shape_cast %53 : vector<8xf32> to vector<8x1xf32>
    %55 = vector.broadcast %54 : vector<8x1xf32> to vector<8x128xf32>
    %56 = arith.divf %52, %55 : vector<8x128xf32>
    %c0_22 = arith.constant 0 : index
    %c0_23 = arith.constant 0 : index
    %57 = vector.load %arg9[%c0_22, %c0_23] : memref<8x128xf32, #tpu.memory_space<vmem>>, vector<8x128xf32>
    tpu.vector_store %arg9[%c0_22, %c0_23], %56 {strides = array<i32>} : memref<8x128xf32, #tpu.memory_space<vmem>>, vector<8x128xf32>,
    return
  }
  func.func @transform_0(%arg0: i32) -> (i32, i32, i32) {
    %c0_i32 = arith.constant 0 : i32
    %c0_i32_0 = arith.constant 0 : i32
    %c0_i32_1 = arith.constant 0 : i32
    return %c0_i32, %arg0, %c0_i32_0 : i32, i32, i32
  }
  func.func @transform_1(%arg0: i32) -> (i32, i32) {
    %c0_i32 = arith.constant 0 : i32
    %c0_i32_0 = arith.constant 0 : i32
    %c0_i32_1 = arith.constant 0 : i32
    return %c0_i32, %c0_i32_0 : i32, i32
  }
  func.func @transform_2(%arg0: i32) -> (i32, i32) {
    %c0_i32 = arith.constant 0 : i32
    %c0_i32_0 = arith.constant 0 : i32
    %c0_i32_1 = arith.constant 0 : i32
    return %c0_i32, %c0_i32_0 : i32, i32
  }
  func.func @transform_3(%arg0: i32) -> (i32, i32) {
    %c0_i32 = arith.constant 0 : i32
    %c0_i32_0 = arith.constant 0 : i32
    %c0_i32_1 = arith.constant 0 : i32
    return %c0_i32, %c0_i32_0 : i32, i32
  }
  func.func @transform_4(%arg0: i32) -> (i32, i32) {
    %c0_i32 = arith.constant 0 : i32
    %c0_i32_0 = arith.constant 0 : i32
    %c0_i32_1 = arith.constant 0 : i32
    return %c0_i32, %c0_i32_0 : i32, i32
  }
  func.func @transform_5(%arg0: i32) -> (i32, i32) {
    %c0_i32 = arith.constant 0 : i32
    %c0_i32_0 = arith.constant 0 : i32
    %c0_i32_1 = arith.constant 0 : i32
    return %c0_i32, %c0_i32_0 : i32, i32
  }
  func.func @transform_6(%arg0: i32) -> (i32, i32) {
    %c0_i32 = arith.constant 0 : i32
    %c0_i32_0 = arith.constant 0 : i32
    %c0_i32_1 = arith.constant 0 : i32
    return %c0_i32, %c0_i32_0 : i32, i32
  }
  func.func @transform_7(%arg0: i32) -> (i32, i32) {
    %c0_i32 = arith.constant 0 : i32
    %c0_i32_0 = arith.constant 0 : i32
    %c0_i32_1 = arith.constant 0 : i32
    return %c0_i32, %c0_i32_0 : i32, i32
  }
  func.func @transform_8(%arg0: i32) -> (i32, i32) {
    %c0_i32 = arith.constant 0 : i32
    %c0_i32_0 = arith.constant 0 : i32
    return %arg0, %c0_i32 : i32, i32
  }
}

</mosaic_0001>

<bundles_post_ra>
// kernel: nli_net_forward.1
= control target key start
LH: loop header
LB: loop body
LE: loop exit
PB: predicated region body
PF: predicated region fallthrough
CT: control target
= control target key end

     0   :  { %vm86_vm0 = vsmask.f32 7424  ;;  %vm181_vm1 = vsmask.f32 6400  ;;  %vm160_vm2 = vcmask 1046528   ;;  %s1488_s15 = smov 32   ;;  %s2013_s0 = inlined_call_operand.vmem [shape: bf16[2,64,32], index: 0, kind: input, shape index: {}]   ;;  %s2014_s2 = inlined_call_operand.vmem [shape: bf16[160,128], index: 2, kind: input, shape index: {}]   ;;  %s2015_s4 = inlined_call_operand.vmem [shape: bf16[512,128], index: 4, kind: input, shape index: {}]   ;;  %s2016_s3 = inlined_call_operand.vmem [shape: f32[1,128], index: 3, kind: input, shape index: {}]   ;;  %s2017_s1 = inlined_call_operand.vmem [shape: f32[8,128], index: 1, kind: input, shape index: {}]   ;;  %s2018_s6 = inlined_call_operand.vmem [shape: bf16[128,128], index: 6, kind: input, shape index: {}]   ;;  %s2019_s5 = inlined_call_operand.vmem [shape: f32[1,128], index: 5, kind: input, shape index: {}]   ;;  %s2020_s7 = inlined_call_operand.vmem [shape: f32[1,128], index: 7, kind: input, shape index: {}]   ;;  %s2021_s8 = inlined_call_operand.vmem [shape: f32[8,128], index: 8, kind: output, shape index: {}]  }
   0x1   :  { %v1542_v0 = vld [vmem:[%s2013_s0] sm:$0xf]  ;;  %v31_v1 = vld [vmem:[%s2013_s0 + $0x4] sm:$0xf]  ;;  %v1553_v3 = vld [vmem:[%s2013_s0 + $0x8] sm:$0xff]   ;;  %s1489_s16 = smov 96  }
   0x2   :  { %v1548_v2 = vcombine.low %v1542_v0, %v31_v1  ;;  %v1558_v4 = vld [vmem:[%s2013_s0 + $0x10] sm:$0xff]   ;;  %v95_v7 = vshll.u32 %v1553_v3, 16  ;;  %v99_v8 = vshrl.u32 %v1553_v3, 16  ;;  %v162_v10 = vrot.slane %v1553_v3, 1  ;;  %v1570_v19 = vld [vmem:[%s2013_s0 + $0x18] sm:$0xff]   ;;  %v1585_v35 = vld [vmem:[%s2013_s0 + $0x20] sm:$0xff]  }
   0x3   :  { %v103_v11 = vshll.u32 %v1558_v4, 16  ;;  %v107_v24 = vshrl.u32 %v1558_v4, 16  ;;  %v111_v29 = vshll.u32 %v1570_v19, 16  ;;  %v164_v31 = vrot.slane %v1558_v4, 1  ;;  %s1490_s19 = smov 64   ;;  %v1598_v45 = vld [vmem:[%s2013_s0 + $0x28] sm:$0xff]   ;;  %vm220_vm7 = vmand %vm160_vm2, %vm181_vm1 }
   0x4   :  { %v88_v5 = vshrl.u32 %v1548_v2, 16  ;;  %v90_v6 = vshll.u32 %v1548_v2, 16  ;;  %v161_v9 = vrot.slane %v1548_v2, 1  ;;  %v97_v13 = vrot.slane %v95_v7, 1  ;;  %v1432_v57 = vld [vmem:[%s2014_s2] sm:$0xff]   ;;  %v1616_v60 = vld [vmem:[%s2013_s0 + $0x30] sm:$0xff]  }
   0x5   :  { %v185_v16 = vrot.slane %v99_v8, 1  ;;  %v186_v17 = vrot.slane %v95_v7, 2  ;;  %v105_v18 = vrot.slane %v103_v11, 1  ;;  %v190_v25 = vrot.slane %v103_v11, 2 }
   0x6   :  { %v92_v12 = vrot.slane %v90_v6, 1  ;;  %v182_v14 = vrot.slane %v88_v5, 1  ;;  %v183_v15 = vrot.slane %v90_v6, 2  ;;  %v101_v23 = vor.u32 %v99_v8, %v97_v13  ;;  %v1433_v8 = vld [vmem:[%s2014_s2 + $0x8] sm:$0xff]  }
   0x7   :  { %v187_v22 = vor.u32 %v186_v17, %v185_v16  ;;  %v189_v28 = vrot.slane %v107_v24, 1  ;;  %v163_v30 = vsel %vm160_vm2, %v161_v9, %v162_v10  ;;  %v115_v32 = vshrl.u32 %v1570_v19, 16  ;;  %v1638_v16 = vld [vmem:[%s2013_s0 + $0x38] sm:$0xff]  }
   0x8   :  { %v93_v20 = vor.u32 %v92_v12, %v88_v5  ;;  %v184_v21 = vor.u32 %v183_v15, %v182_v14  ;;  %v106_v33 = vsel %vm86_vm0, %v101_v23, %v105_v18  ;;  %v113_v36 = vrot.slane %v111_v29, 1 }
   0x9   :  { %v191_v34 = vor.u32 %v190_v25, %v189_v28  ;;  %v166_v37 = vrot.slane %v1570_v19, 1  ;;  %v165_v38 = vsel %vm160_vm2, %v162_v10, %v164_v31  ;;  %v109_v39 = vor.u32 %v107_v24, %v105_v18 }
   0xa   :  { %v98_v26 = vsel %vm86_vm0, %v93_v20, %v97_v13  ;;  %v188_v27 = vsel %vm181_vm1, %v184_v21, %v187_v22  ;;  %v193_v40 = vrot.slane %v115_v32, 1  ;;  %v194_v41 = vrot.slane %v111_v29, 2 }
   0xb   :  { %244 = vrot.lane.b32.xlu0 %v98_v26, %s1488_s15  ;;  %278 = vrot.lane.b32.xlu1 %v188_v27, %s1489_s16  ;;  %v192_v42 = vsel %vm181_vm1, %v187_v22, %v191_v34  ;;  %v119_v43 = vshll.u32 %v1585_v35, 16  ;;  %v123_v44 = vshrl.u32 %v1585_v35, 16  ;;  %v114_v46 = vsel %vm86_vm0, %v109_v39, %v113_v36  ;;  %v1434_v22 = vld [vmem:[%s2014_s2 + $0x10] sm:$0xff]  }
   0xc   :  { %v167_v47 = vsel %vm160_vm2, %v164_v31, %v166_v37  ;;  %v195_v48 = vor.u32 %v194_v41, %v193_v40  ;;  %v117_v49 = vor.u32 %v115_v32, %v113_v36  ;;  %v168_v53 = vrot.slane %v1585_v35, 1  ;;  %v1435_v31 = vld [vmem:[%s2014_s2 + $0x18] sm:$0xff]  }
   0xd   :  { %v121_v50 = vrot.slane %v119_v43, 1  ;;  %v197_v51 = vrot.slane %v123_v44, 1  ;;  %v198_v52 = vrot.slane %v119_v43, 2  ;;  %v127_v54 = vshll.u32 %v1598_v45, 16 }
   0xe   :  { %v196_v55 = vsel %vm181_vm1, %v191_v34, %v195_v48  ;;  %v131_v56 = vshrl.u32 %v1598_v45, 16  ;;  %v169_v61 = vsel %vm160_vm2, %v166_v37, %v168_v53  ;;  %v170_v1 = vrot.slane %v1598_v45, 1 }
   0xf   :  { %261 = vrot.lane.b32.xlu0 %v163_v30, %s1490_s19  ;;  %246 = vrot.lane.b32.xlu1 %v106_v33, %s1488_s15  ;;  %v122_v58 = vsel %vm86_vm0, %v117_v49, %v121_v50  ;;  %v199_v59 = vor.u32 %v198_v52, %v197_v51  ;;  %v125_v62 = vor.u32 %v123_v44, %v121_v50  ;;  %v129_v63 = vrot.slane %v127_v54, 1  ;;  %v1437_v49 = vld [vmem:[%s2014_s2 + $0x28] sm:$0xff]  }
  0x10   :  { %v202_v5 = vrot.slane %v127_v54, 2  ;;  %v1491_v6 = vmov 0   ;;  %v201_v7 = vrot.slane %v131_v56, 1  ;;  %vm222_vm3 = vcmask 1045504  }
  0x11   :  { %456 = vmatprep.subr.bf16.mxu0 %v1491_v6  ;;  %v223_v9 = vrot.slane %v1548_v2, 2  ;;  %v224_v10 = vrot.slane %v1553_v3, 2  ;;  %v200_v11 = vsel %vm181_vm1, %v195_v48, %v199_v59  ;;  %v135_v12 = vshll.u32 %v1616_v60, 16 }
  0x12   :  { %457 = vmatpush1.bf16.msra.mxu0 %v1432_v57  ;;  %v139_v13 = vshrl.u32 %v1616_v60, 16  ;;  %v226_v14 = vrot.slane %v1558_v4, 2  ;;  %vm294_vm4 = vcmask 261120   ;;  %v130_v18 = vsel %vm86_vm0, %v125_v62, %v129_v63 }
  0x13   :  { %263 = vrot.lane.b32.xlu0 %v165_v38, %s1490_s19  ;;  %280 = vrot.lane.b32.xlu1 %v192_v42, %s1489_s16  ;;  %v225_v15 = vsel %vm222_vm3, %v223_v9, %v224_v10  ;;  %v171_v20 = vsel %vm160_vm2, %v168_v53, %v170_v1  ;;  %v203_v21 = vor.u32 %v202_v5, %v201_v7  ;;  %v137_v24 = vrot.slane %v135_v12, 1  ;;  %v1436_v42 = vld [vmem:[%s2014_s2 + $0x20] sm:$0xff]  }
  0x14   :  { %458 = vmatprep.subr.bf16.mxu0 %v1491_v6  ;;  %1293 = vmatprep.mubr.msk.bf16.mxu0 %vm294_vm4, %v225_v15  ;;  %v1644_v17 = vsel %vm222_vm3, %v224_v10, %v226_v14  ;;  %v133_v23 = vor.u32 %v131_v56, %v129_v63  ;;  %v205_v25 = vrot.slane %v139_v13, 1  ;;  %v206_v26 = vrot.slane %v135_v12, 2  ;;  %v1438_v56 = vld [vmem:[%s2014_s2 + $0x30] sm:$0xff]   ;;  %v1440_v7 = vld [vmem:[%s2014_s2 + $0x40] sm:$0xff]  }
  0x15   :  { %v172_v27 = vrot.slane %v1616_v60, 1  ;;  %v143_v28 = vshll.u32 %v1638_v16, 16  ;;  %v204_v29 = vsel %vm181_vm1, %v199_v59, %v203_v21  ;;  %v147_v30 = vshrl.u32 %v1638_v16, 16 }
  0x16   :  { %459 = vmatpush1.bf16.msra.mxu0 %v1433_v8  ;;  %v138_v32 = vsel %vm86_vm0, %v133_v23, %v137_v24  ;;  %v207_v33 = vor.u32 %v206_v26, %v205_v25  ;;  %v1282_v34 = vcombine.low %v1542_v0, %v1542_v0  ;;  %v141_v38 = vor.u32 %v139_v13, %v137_v24  ;;  %v1441_v8 = vld [vmem:[%s2014_s2 + $0x48] sm:$0xff]  }
  0x17   :  { %248 = vrot.lane.b32.xlu0 %v114_v46, %s1488_s15  ;;  %265 = vrot.lane.b32.xlu1 %v167_v47, %s1490_s19  ;;  %v173_v36 = vsel %vm160_vm2, %v170_v1, %v172_v27  ;;  %v145_v37 = vrot.slane %v143_v28, 1  ;;  %v174_v39 = vrot.slane %v1638_v16, 1  ;;  %v209_v40 = vrot.slane %v147_v30, 1 }
  0x18   :  { %460 = vmatprep.subr.bf16.mxu0 %v1491_v6  ;;  %v210_v41 = vrot.slane %v143_v28, 2  ;;  %v208_v0 = vsel %vm181_vm1, %v203_v21, %v207_v33  ;;  %v153_v43 = vshll.u32 %v1282_v34, 16  ;;  %v214_v44 = vshrl.u32 %v1282_v34, 16 }
  0x19   :  { %vm157_vm5 = vcmask 1047552   ;;  %v146_v46 = vsel %vm86_vm0, %v141_v38, %v145_v37  ;;  %v175_v47 = vsel %vm160_vm2, %v172_v27, %v174_v39  ;;  %v149_v50 = vor.u32 %v147_v30, %v145_v37 }
  0x1a   :  { %461 = vmatpush1.bf16.msra.mxu0 %v1434_v22  ;;  %v211_v48 = vor.u32 %v210_v41, %v209_v40  ;;  %v155_v51 = vrot.slane %v153_v43, 1  ;;  %v216_v52 = vrot.slane %v214_v44, 1  ;;  %v217_v53 = vrot.slane %v153_v43, 2  ;;  %vm158_vm6 = vmand %vm157_vm5, %vm86_vm0 }
  0x1b   :  { %282 = vrot.lane.b32.xlu0 %v196_v55, %s1489_s16  ;;  %250 = vrot.lane.b32.xlu1 %v122_v58, %s1488_s15  ;;  %v176_v55 = vrot.slane %v1282_v34, 1  ;;  %v236_v62 = vrot.slane %v1638_v16, 2  ;;  %v238_v63 = vrot.slane %v1282_v34, 2  ;;  %vm311_vm8 = vcmask 523264  }
  0x1c   :  { %462 = vmatprep.subr.bf16.mxu0 %v1491_v6  ;;  %v212_v54 = vsel %vm181_vm1, %v207_v33, %v211_v48  ;;  %v159_v57 = vsel %vm158_vm6, %v149_v50, %v155_v51  ;;  %v218_v58 = vor.u32 %v217_v53, %v216_v52  ;;  %vm328_vm9 = vcmask 785408  }
  0x1d   :  { %v180_v59 = vsel %vm160_vm2, %v174_v39, %v176_v55  ;;  %v1704_v5 = vsel %vm222_vm3, %v236_v62, %v238_v63  ;;  %v1443_v63 = vld [vmem:[%s2015_s4] sm:$0xff]   ;;  %vm737_vm10 = vcmask 1041409   ;;  %vm739_vm11 = vcmask 1042434  }
  0x1e   :  { %463 = vmatpush1.bf16.msra.mxu0 %v1435_v31  ;;  %v221_v1 = vsel %vm220_vm7, %v211_v48, %v218_v58  ;;  %vm741_vm12 = vcmask 1043459   ;;  %vm743_vm13 = vcmask 1044484   ;;  %vm745_vm14 = vcmask 1045509  }
  0x1f   :  { %267 = vrot.lane.b32.xlu0 %v169_v61, %s1490_s19  ;;  %284 = vrot.lane.b32.xlu1 %v200_v11, %s1489_s16  ;;  %v1439_v61 = vld [vmem:[%s2014_s2 + $0x38] sm:$0xff]   ;;  %vm747_vm15 = vcmask 1046534   ;;  %vm749_vm0 = vcmask 1047559   ;;  %vm1493_vm1 = vmmov 0  }
  0x20   :  { %464 = vmatprep.subr.bf16.mxu0 %v1491_v6 }
  0x22   :  { %465 = vmatpush1.bf16.msra.mxu0 %v1436_v42 }
  0x23   :  { %252 = vrot.lane.b32.xlu0 %v130_v18, %s1488_s15  ;;  %269 = vrot.lane.b32.xlu1 %v171_v20, %s1490_s19 }
  0x24   :  { %466 = vmatprep.subr.bf16.mxu0 %v1491_v6 }
  0x26   :  { %467 = vmatpush1.bf16.msra.mxu0 %v1437_v49 }
  0x27   :  { %286 = vrot.lane.b32.xlu0 %v204_v29, %s1489_s16  ;;  %254 = vrot.lane.b32.xlu1 %v138_v32, %s1488_s15 }
  0x28   :  { %468 = vmatprep.subr.bf16.mxu0 %v1491_v6 }
  0x2a   :  { %469 = vmatpush1.bf16.msra.mxu0 %v1438_v56 }
  0x2b   :  { %271 = vrot.lane.b32.xlu0 %v173_v36, %s1490_s19  ;;  %288 = vrot.lane.b32.xlu1 %v208_v0, %s1489_s16 }
  0x2c   :  { %470 = vmatprep.subr.bf16.mxu0 %v1491_v6 }
  0x2e   :  { %471 = vmatpush1.bf16.msra.mxu0 %v1439_v61 }
  0x2f   :  { %256 = vrot.lane.b32.xlu0 %v146_v46, %s1488_s15  ;;  %273 = vrot.lane.b32.xlu1 %v175_v47, %s1490_s19 }
  0x30   :  { %472 = vmatprep.subr.bf16.mxu0 %v1491_v6 }
  0x32   :  { %473 = vmatpush1.bf16.msra.mxu0 %v1440_v7  ;;  %v1447_v7 = vld [vmem:[%s2015_s4 + $0x10] sm:$0xff]  }
  0x33   :  { %290 = vrot.lane.b32.xlu0 %v212_v54, %s1489_s16  ;;  %258 = vrot.lane.b32.xlu1 %v159_v57, %s1488_s15 }
  0x34   :  { %474 = vmatprep.subr.bf16.mxu0 %v1491_v6  ;;  %v228_v6 = vrot.slane %v1570_v19, 2 }
  0x36   :  { %475 = vmatpush1.bf16.msra.mxu0 %v1441_v8  ;;  %v229_v24 = vsel %vm222_vm3, %v226_v14, %v228_v6  ;;  %v1448_v8 = vld [vmem:[%s2015_s4 + $0x58] sm:$0xff]  }
  0x37   :  { %275 = vrot.lane.b32.xlu0 %v180_v59, %s1490_s19  ;;  %292 = vrot.lane.b32.xlu1 %v221_v1, %s1489_s16  ;;  %v1445_v1 = vld [vmem:[%s2015_s4 + $0x8] sm:$0xff]  }
  0x7d   :  { %v245_v9 = vpop.permute.xlu0 %244  ;;  %v279_v10 = vpop.permute.xlu1 %278 }
  0x7e   :  { %v296_v11 = vsel %vm294_vm4, %v1548_v2, %v245_v9  ;;  %v1449_v9 = vld [vmem:[%s2015_s4 + $0x18] sm:$0xff]  }
  0x81   :  { %v262_v12 = vpop.permute.xlu0 %261  ;;  %v247_v15 = vpop.permute.xlu1 %246 }
  0x82   :  { %v313_v13 = vsel %vm311_vm8, %v296_v11, %v262_v12  ;;  %v298_v20 = vsel %vm294_vm4, %v1553_v3, %v247_v15  ;;  %v1451_v11 = vld [vmem:[%s2015_s4 + $0x20] sm:$0xff]   ;;  %v1452_v12 = vld [vmem:[%s2015_s4 + $0x68] sm:$0xff]   ;;  %v1454_v15 = vld [vmem:[%s2015_s4 + $0x70] sm:$0xff]  }
  0x83   :  { %v330_v18 = vsel %vm328_vm9, %v313_v13, %v279_v10  ;;  %v1450_v10 = vld [vmem:[%s2015_s4 + $0x60] sm:$0xff]   ;;  %v1453_v13 = vld [vmem:[%s2015_s4 + $0x28] sm:$0xff]  }
  0x84   :  { %489 = vmatmul.mubr.bf16.vlgmr.msra.gmra.mrb[0].mxu0 %v330_v18  ;;  %v1455_v18 = vld [vmem:[%s2015_s4 + $0x30] sm:$0xff]  }
  0x85   :  { %v264_v21 = vpop.permute.xlu0 %263  ;;  %1294 = vmatprep.mubr.msk.bf16.mxu0 %vm294_vm4, %v1644_v17  ;;  %v281_v23 = vpop.permute.xlu1 %280  ;;  %v230_v17 = vrot.slane %v1585_v35, 2 }
  0x86   :  { %v315_v22 = vsel %vm311_vm8, %v298_v20, %v264_v21  ;;  %v1456_v20 = vld [vmem:[%s2015_s4 + $0x78] sm:$0xff]  }
  0x87   :  { %v333_v25 = vsel %vm328_vm9, %v315_v22, %v281_v23  ;;  %v231_v30 = vsel %vm222_vm3, %v228_v6, %v230_v17  ;;  %v1457_v21 = vld [vmem:[%s2015_s4 + $0x38] sm:$0xff]   ;;  %v1458_v6 = vld [vmem:[%s2015_s4 + $0xc0] sm:$0xff]  }
  0x88   :  { %v1824_v22 = vld [vmem:[%s2016_s3] ss:$0 sm:$0xff] }
  0x89   :  { %v249_v2 = vpop.permute.xlu0 %248  ;;  %v266_v26 = vpop.permute.xlu1 %265 }
  0x8a   :  { %v300_v3 = vsel %vm294_vm4, %v1558_v4, %v249_v2  ;;  %v232_v4 = vrot.slane %v1598_v45, 2 }
  0x8b   :  { %v317_v27 = vsel %vm311_vm8, %v300_v3, %v266_v26 }
  0x8c   :  { %497 = vmatmul.mubr.bf16.gmra.mrb[4].mxu0 %v333_v25  ;;  %v233_v37 = vsel %vm222_vm3, %v230_v17, %v232_v4  ;;  %v1830_v25 = vld [vmem:[%s2017_s1] sm:$0xff] }
  0x8d   :  { %1295 = vmatprep.mubr.msk.bf16.mxu0 %vm294_vm4, %v229_v24  ;;  %v283_v28 = vpop.permute.xlu0 %282  ;;  %v251_v29 = vpop.permute.xlu1 %250 }
  0x8e   :  { %v336_v31 = vsel %vm328_vm9, %v317_v27, %v283_v28  ;;  %v302_v32 = vsel %vm294_vm4, %v1570_v19, %v251_v29  ;;  %v234_v19 = vrot.slane %v1616_v60, 2 }
  0x90   :  { %v235_v43 = vsel %vm222_vm3, %v232_v4, %v234_v19  ;;  %v237_v50 = vsel %vm222_vm3, %v234_v19, %v236_v62  ;;  %v1442_v62 = vld [vmem:[%s2015_s4 + $0x40] sm:$0xff]  }
  0x91   :  { %v268_v14 = vpop.permute.xlu0 %267  ;;  %v285_v34 = vpop.permute.xlu1 %284  ;;  %1344 = vmatprep.subr.bf16.mxu1 %v1442_v62 }
  0x92   :  { %v319_v33 = vsel %vm311_vm8, %v302_v32, %v268_v14  ;;  %1345 = vmatpush3.bf16.msra.mxu1 %v1443_v63 }
  0x93   :  { %v339_v38 = vsel %vm328_vm9, %v319_v33, %v285_v34 }
  0x94   :  { %505 = vmatmul.mubr.bf16.gmra.mrb[8].mxu0 %v336_v31 }
  0x95   :  { %1296 = vmatprep.mubr.msk.bf16.mxu0 %vm294_vm4, %v231_v30  ;;  %v253_v36 = vpop.permute.xlu0 %252  ;;  %v270_v39 = vpop.permute.xlu1 %269 }
  0x96   :  { %v304_v40 = vsel %vm294_vm4, %v1585_v35, %v253_v36 }
  0x97   :  { %v321_v41 = vsel %vm311_vm8, %v304_v40, %v270_v39 }
  0x99   :  { %v287_v42 = vpop.permute.xlu0 %286  ;;  %v255_v0 = vpop.permute.xlu1 %254 }
  0x9a   :  { %v342_v44 = vsel %vm328_vm9, %v321_v41, %v287_v42  ;;  %v306_v47 = vsel %vm294_vm4, %v1598_v45, %v255_v0 }
  0x9c   :  { %513 = vmatmul.mubr.bf16.gmra.mrb[12].mxu0 %v339_v38 }
  0x9d   :  { %1297 = vmatprep.mubr.msk.bf16.mxu0 %vm294_vm4, %v233_v37  ;;  %v272_v46 = vpop.permute.xlu0 %271  ;;  %v289_v48 = vpop.permute.xlu1 %288 }
  0x9e   :  { %v323_v35 = vsel %vm311_vm8, %v306_v47, %v272_v46 }
  0x9f   :  { %v345_v51 = vsel %vm328_vm9, %v323_v35, %v289_v48 }
  0xa1   :  { %v257_v49 = vpop.permute.xlu0 %256  ;;  %v274_v52 = vpop.permute.xlu1 %273 }
  0xa2   :  { %v308_v53 = vsel %vm294_vm4, %v1616_v60, %v257_v49 }
  0xa3   :  { %v325_v45 = vsel %vm311_vm8, %v308_v53, %v274_v52 }
  0xa4   :  { %521 = vmatmul.mubr.bf16.gmra.mrb[16].mxu0 %v342_v44 }
  0xa5   :  { %1298 = vmatprep.mubr.msk.bf16.mxu0 %vm294_vm4, %v235_v43  ;;  %v291_v54 = vpop.permute.xlu0 %290  ;;  %v259_v55 = vpop.permute.xlu1 %258 }
  0xa6   :  { %v348_v56 = vsel %vm328_vm9, %v325_v45, %v291_v54  ;;  %v310_v57 = vsel %vm294_vm4, %v1638_v16, %v259_v55  ;;  %v1444_v16 = vld [vmem:[%s2015_s4 + $0x48] sm:$0xff]  }
  0xa7   :  { %1346 = vmatprep.subr.bf16.mxu1 %v1444_v16 }
  0xa8   :  { %1347 = vmatpush3.bf16.msra.mxu1 %v1445_v1 }
  0xa9   :  { %v276_v58 = vpop.permute.xlu0 %275  ;;  %v293_v61 = vpop.permute.xlu1 %292 }
  0xaa   :  { %v327_v59 = vsel %vm311_vm8, %v310_v57, %v276_v58 }
  0xab   :  { %v351_v60 = vsel %vm328_vm9, %v327_v59, %v293_v61 }
  0xac   :  { %529 = vmatmul.mubr.bf16.gmra.mrb[20].mxu0 %v345_v51 }
  0xad   :  { %1299 = vmatprep.mubr.msk.bf16.mxu0 %vm294_vm4, %v237_v50 }
  0xb4   :  { %537 = vmatmul.mubr.bf16.gmra.mrb[24].mxu0 %v348_v56 }
  0xb5   :  { %1300 = vmatprep.mubr.msk.bf16.mxu0 %vm294_vm4, %v1704_v5  ;;  %v1446_v5 = vld [vmem:[%s2015_s4 + $0x50] sm:$0xff]  }
  0xb6   :  { %1348 = vmatprep.subr.bf16.mxu1 %v1446_v5 }
  0xb7   :  { %1349 = vmatpush3.bf16.msra.mxu1 %v1447_v7 }
  0xb8   :  { %1350 = vmatprep.subr.bf16.mxu1 %v1448_v8 }
  0xbb   :  { %1351 = vmatpush3.bf16.msra.mxu1 %v1449_v9 }
  0xbc   :  { %545 = vmatmul.mubr.bf16.gmra.mrb[28].mxu0 %v351_v60  ;;  %1352 = vmatprep.subr.bf16.mxu1 %v1450_v10 }
  0xbf   :  { %1353 = vmatpush3.bf16.msra.mxu1 %v1451_v11 }
  0xc0   :  { %1354 = vmatprep.subr.bf16.mxu1 %v1452_v12 }
  0xc3   :  { %1355 = vmatpush3.bf16.msra.mxu1 %v1453_v13 }
  0xc4   :  { %1356 = vmatprep.subr.bf16.mxu1 %v1454_v15 }
  0xc7   :  { %1357 = vmatpush3.bf16.msra.mxu1 %v1455_v18 }
  0xc8   :  { %1358 = vmatprep.subr.bf16.mxu1 %v1456_v20 }
  0xcb   :  { %1359 = vmatpush3.bf16.msra.mxu1 %v1457_v21 }
  0xcc   :  { %1366 = vmatprep.subr.bf16.mxu1 %v1458_v6 }
 0x157   :  { %v490_v23 = vpop.f32.mrb[0].mxu0 }
 0x158   :  { %v560_v2 = vadd.f32 %v1824_v22, %v490_v23  ;;  %v492_v24 = vpop.f32.mrb[1].mxu0 }
 0x159   :  { %v493_v26 = vpop.f32.mrb[2].mxu0 }
 0x15a   :  { %v576_v3 = vmax.f32 %v560_v2, 0.0  ;;  %v561_v17 = vadd.f32 %v1824_v22, %v493_v26  ;;  %v495_v27 = vpop.f32.mrb[3].mxu0 }
 0x15c   :  { %v593_v28 = vmul.f32 %v1830_v25, %v576_v3  ;;  %v577_v29 = vmax.f32 %v561_v17, 0.0 }
 0x15e   :  { %v609_v30 = vrot.slane %v593_v28, 4  ;;  %v594_v31 = vmul.f32 %v1830_v25, %v577_v29 }
 0x15f   :  { %v498_v14 = vpop.f32.mrb[4].mxu0 }
 0x160   :  { %v610_v32 = vmax.f32 %v593_v28, %v609_v30  ;;  %v615_v4 = vrot.slane %v594_v31, 4  ;;  %v562_v33 = vadd.f32 %v1824_v22, %v498_v14  ;;  %v500_v34 = vpop.f32.mrb[5].mxu0 }
 0x161   :  { %v501_v36 = vpop.f32.mrb[6].mxu0 }
 0x162   :  { %v611_v37 = vrot.slane %v610_v32, 2  ;;  %v616_v38 = vmax.f32 %v594_v31, %v615_v4  ;;  %v578_v39 = vmax.f32 %v562_v33, 0.0  ;;  %v563_v40 = vadd.f32 %v1824_v22, %v501_v36  ;;  %v503_v19 = vpop.f32.mrb[7].mxu0 }
 0x164   :  { %v612_v41 = vmax.f32 %v610_v32, %v611_v37  ;;  %v617_v42 = vrot.slane %v616_v38, 2  ;;  %v595_v0 = vmul.f32 %v1830_v25, %v578_v39  ;;  %v579_v43 = vmax.f32 %v563_v40, 0.0 }
 0x166   :  { %v613_v44 = vrot.slane %v612_v41, 1  ;;  %v618_v46 = vmax.f32 %v616_v38, %v617_v42  ;;  %v621_v47 = vrot.slane %v595_v0, 4  ;;  %v596_v35 = vmul.f32 %v1830_v25, %v579_v43 }
 0x167   :  { %v506_v48 = vpop.f32.mrb[8].mxu0 }
 0x168   :  { %v619_v49 = vrot.slane %v618_v46, 1  ;;  %v622_v50 = vmax.f32 %v595_v0, %v621_v47  ;;  %v627_v51 = vrot.slane %v596_v35, 4  ;;  %v508_v52 = vpop.f32.mrb[9].mxu0  ;;  %v1839_v53 = vmax.f32 %v612_v41, %v613_v44 }
 0x169   :  { %v564_v45 = vadd.f32 %v1824_v22, %v506_v48  ;;  %v509_v54 = vpop.f32.mrb[10].mxu0 }
 0x16a   :  { %v1842_v55 = vmax.f32 %v618_v46, %v619_v49  ;;  %v623_v56 = vrot.slane %v622_v50, 2  ;;  %v628_v57 = vmax.f32 %v596_v35, %v627_v51  ;;  %v565_v58 = vadd.f32 %v1824_v22, %v509_v54  ;;  %v511_v59 = vpop.f32.mrb[11].mxu0 }
 0x16b   :  { %v580_v61 = vmax.f32 %v564_v45, 0.0 }
 0x16c   :  { %v738_v60 = vsel %vm737_vm10, %v1842_v55, %v1839_v53  ;;  %v624_v62 = vmax.f32 %v622_v50, %v623_v56  ;;  %v629_v63 = vrot.slane %v628_v57, 2  ;;  %v581_v16 = vmax.f32 %v565_v58, 0.0 }
 0x16d   :  { %v597_v1 = vmul.f32 %v1830_v25, %v580_v61 }
 0x16e   :  { %v625_v5 = vrot.slane %v624_v62, 1  ;;  %v630_v7 = vmax.f32 %v628_v57, %v629_v63  ;;  %v598_v8 = vmul.f32 %v1830_v25, %v581_v16 }
 0x16f   :  { %v633_v9 = vrot.slane %v597_v1, 4  ;;  %v514_v10 = vpop.f32.mrb[12].mxu0 }
 0x170   :  { %v1850_v11 = vmax.f32 %v624_v62, %v625_v5  ;;  %v631_v12 = vrot.slane %v630_v7, 1  ;;  %v639_v13 = vrot.slane %v598_v8, 4  ;;  %v566_v15 = vadd.f32 %v1824_v22, %v514_v10  ;;  %v516_v18 = vpop.f32.mrb[13].mxu0 }
 0x171   :  { %v634_v20 = vmax.f32 %v597_v1, %v633_v9  ;;  %v517_v21 = vpop.f32.mrb[14].mxu0 }
 0x172   :  { %v740_v6 = vsel %vm739_vm11, %v1850_v11, %v738_v60  ;;  %v1855_v23 = vmax.f32 %v630_v7, %v631_v12  ;;  %v640_v2 = vmax.f32 %v598_v8, %v639_v13  ;;  %v582_v24 = vmax.f32 %v566_v15, 0.0  ;;  %v519_v26 = vpop.f32.mrb[15].mxu0 }
 0x173   :  { %v635_v3 = vrot.slane %v634_v20, 2  ;;  %v567_v17 = vadd.f32 %v1824_v22, %v517_v21 }
 0x174   :  { %v641_v27 = vrot.slane %v640_v2, 2  ;;  %v599_v28 = vmul.f32 %v1830_v25, %v582_v24  ;;  %v742_v29 = vsel %vm741_vm12, %v1855_v23, %v740_v6 }
 0x175   :  { %v636_v30 = vmax.f32 %v634_v20, %v635_v3  ;;  %v583_v31 = vmax.f32 %v567_v17, 0.0 }
 0x176   :  { %v642_v14 = vmax.f32 %v640_v2, %v641_v27  ;;  %v645_v32 = vrot.slane %v599_v28, 4 }
 0x177   :  { %v637_v4 = vrot.slane %v636_v30, 1  ;;  %v600_v33 = vmul.f32 %v1830_v25, %v583_v31  ;;  %v522_v34 = vpop.f32.mrb[16].mxu0 }
 0x178   :  { %v643_v36 = vrot.slane %v642_v14, 1  ;;  %v646_v37 = vmax.f32 %v599_v28, %v645_v32  ;;  %v568_v38 = vadd.f32 %v1824_v22, %v522_v34  ;;  %v524_v39 = vpop.f32.mrb[17].mxu0 }
 0x179   :  { %v1863_v40 = vmax.f32 %v636_v30, %v637_v4  ;;  %v651_v19 = vrot.slane %v600_v33, 4  ;;  %v525_v41 = vpop.f32.mrb[18].mxu0 }
 0x17a   :  { %v1865_v42 = vmax.f32 %v642_v14, %v643_v36  ;;  %v647_v0 = vrot.slane %v646_v37, 2  ;;  %v584_v43 = vmax.f32 %v568_v38, 0.0  ;;  %v569_v44 = vadd.f32 %v1824_v22, %v525_v41  ;;  %v527_v46 = vpop.f32.mrb[19].mxu0 }
 0x17b   :  { %v652_v47 = vmax.f32 %v600_v33, %v651_v19  ;;  %v744_v35 = vsel %vm743_vm13, %v1863_v40, %v742_v29 }
 0x17c   :  { %v648_v48 = vmax.f32 %v646_v37, %v647_v0  ;;  %v601_v49 = vmul.f32 %v1830_v25, %v584_v43  ;;  %v585_v50 = vmax.f32 %v569_v44, 0.0  ;;  %v746_v51 = vsel %vm745_vm14, %v1865_v42, %v744_v35 }
 0x17d   :  { %v653_v52 = vrot.slane %v652_v47, 2 }
 0x17e   :  { %v649_v45 = vrot.slane %v648_v48, 1  ;;  %v657_v54 = vrot.slane %v601_v49, 4  ;;  %v602_v56 = vmul.f32 %v1830_v25, %v585_v50 }
 0x17f   :  { %v654_v57 = vmax.f32 %v652_v47, %v653_v52  ;;  %v530_v58 = vpop.f32.mrb[20].mxu0 }
 0x180   :  { %v1874_v59 = vmax.f32 %v648_v48, %v649_v45  ;;  %v658_v61 = vmax.f32 %v601_v49, %v657_v54  ;;  %v663_v60 = vrot.slane %v602_v56, 4  ;;  %v570_v62 = vadd.f32 %v1824_v22, %v530_v58  ;;  %v532_v63 = vpop.f32.mrb[21].mxu0 }
 0x181   :  { %v655_v16 = vrot.slane %v654_v57, 1  ;;  %v533_v1 = vpop.f32.mrb[22].mxu0 }
 0x182   :  { %v659_v5 = vrot.slane %v658_v61, 2  ;;  %v664_v7 = vmax.f32 %v602_v56, %v663_v60  ;;  %v586_v8 = vmax.f32 %v570_v62, 0.0  ;;  %v571_v9 = vadd.f32 %v1824_v22, %v533_v1  ;;  %v535_v10 = vpop.f32.mrb[23].mxu0 }
 0x183   :  { %v1878_v12 = vmax.f32 %v654_v57, %v655_v16  ;;  %v748_v13 = vsel %vm747_vm15, %v1874_v59, %v746_v51 }
 0x184   :  { %v660_v15 = vmax.f32 %v658_v61, %v659_v5  ;;  %v665_v18 = vrot.slane %v664_v7, 2  ;;  %v603_v20 = vmul.f32 %v1830_v25, %v586_v8  ;;  %v587_v21 = vmax.f32 %v571_v9, 0.0 }
 0x185   :  { %v1885_v6 = vsel %vm749_vm0, %v1878_v12, %v748_v13 }
 0x186   :  { %v661_v2 = vrot.slane %v660_v15, 1  ;;  %v666_v24 = vmax.f32 %v664_v7, %v665_v18  ;;  %v669_v26 = vrot.slane %v603_v20, 4  ;;  %v604_v3 = vmul.f32 %v1830_v25, %v587_v21 }
 0x187   :  { %v538_v17 = vpop.f32.mrb[24].mxu0 }
 0x188   :  { %v662_v27 = vmax.f32 %v660_v15, %v661_v2  ;;  %v667_v28 = vrot.slane %v666_v24, 1  ;;  %v670_v29 = vmax.f32 %v603_v20, %v669_v26  ;;  %v675_v30 = vrot.slane %v604_v3, 4  ;;  %v540_v31 = vpop.f32.mrb[25].mxu0 }
 0x189   :  { %v572_v14 = vadd.f32 %v1824_v22, %v538_v17  ;;  %v541_v32 = vpop.f32.mrb[26].mxu0 }
 0x18a   :  { %v705_v4 = vsub.f32 %v1839_v53, %v662_v27  ;;  %v721_v33 = vmul.f32 %v662_v27, %v1839_v53  ;;  %v668_v34 = vmax.f32 %v666_v24, %v667_v28  ;;  %v671_v36 = vrot.slane %v670_v29, 2  ;;  %v543_v37 = vpop.f32.mrb[27].mxu0 }
 0x18b   :  { %v676_v38 = vmax.f32 %v604_v3, %v675_v30  ;;  %v588_v39 = vmax.f32 %v572_v14, 0.0  ;;  %v573_v19 = vadd.f32 %v1824_v22, %v541_v32 }
 0x18c   :  { %v706_v41 = vsub.f32 %v1842_v55, %v668_v34  ;;  %v722_v0 = vmul.f32 %v668_v34, %v1842_v55  ;;  %v760_v43 = vsel %vm737_vm10, %v668_v34, %v662_v27  ;;  %v672_v44 = vmax.f32 %v670_v29, %v671_v36 }
 0x18d   :  { %v677_v46 = vrot.slane %v676_v38, 2  ;;  %v605_v47 = vmul.f32 %v1830_v25, %v588_v39  ;;  %v589_v35 = vmax.f32 %v573_v19, 0.0  ;;  %v713_v48 = vand.u32 2147483647, %v705_v4 }
 0x18e   :  { %v714_v53 = vand.u32 2147483647, %v706_v41  ;;  %v792_v49 = vsel %vm737_vm10, %v722_v0, %v721_v33  ;;  %v673_v50 = vrot.slane %v672_v44, 1 }
 0x18f   :  { %v678_v51 = vmax.f32 %v676_v38, %v677_v46  ;;  %v681_v52 = vrot.slane %v605_v47, 4  ;;  %v606_v45 = vmul.f32 %v1830_v25, %v589_v35  ;;  %v546_v54 = vpop.f32.mrb[28].mxu0 }
 0x190   :  { %v776_v56 = vsel %vm737_vm10, %v714_v53, %v713_v48  ;;  %v574_v55 = vadd.f32 %v1824_v22, %v546_v54  ;;  %v548_v57 = vpop.f32.mrb[29].mxu0  ;;  %v674_v58 = vmax.f32 %v672_v44, %v673_v50 }
 0x191   :  { %v679_v61 = vrot.slane %v678_v51, 1  ;;  %v682_v60 = vmax.f32 %v605_v47, %v681_v52  ;;  %v687_v62 = vrot.slane %v606_v45, 4  ;;  %v549_v63 = vpop.f32.mrb[30].mxu0 }
 0x192   :  { %v590_v16 = vmax.f32 %v574_v55, 0.0  ;;  %v575_v1 = vadd.f32 %v1824_v22, %v549_v63  ;;  %v551_v5 = vpop.f32.mrb[31].mxu0  ;;  %v707_v7 = vsub.f32 %v1850_v11, %v674_v58  ;;  %v723_v8 = vmul.f32 %v674_v58, %v1850_v11  ;;  %v1459_v63 = vld [vmem:[%s2015_s4 + $0x80] sm:$0xff]  }
 0x193   :  { %v680_v9 = vmax.f32 %v678_v51, %v679_v61  ;;  %v683_v10 = vrot.slane %v682_v60, 2  ;;  %v688_v13 = vmax.f32 %v606_v45, %v687_v62  ;;  %v761_v20 = vsel %vm739_vm11, %v674_v58, %v760_v43  ;;  %v1460_v5 = vld [vmem:[%s2015_s4 + $0xc8] sm:$0xff]  }
 0x194   :  { %v607_v15 = vmul.f32 %v1830_v25, %v590_v16  ;;  %v591_v18 = vmax.f32 %v575_v1, 0.0  ;;  %v715_v21 = vand.u32 2147483647, %v707_v7  ;;  %v793_v30 = vsel %vm739_vm11, %v723_v8, %v792_v49 }
 0x195   :  { %v708_v2 = vsub.f32 %v1855_v23, %v680_v9  ;;  %v724_v24 = vmul.f32 %v680_v9, %v1855_v23  ;;  %v684_v26 = vmax.f32 %v682_v60, %v683_v10  ;;  %v689_v22 = vrot.slane %v688_v13, 2  ;;  %v1462_v10 = vld [vmem:[%s2015_s4 + $0xd0] sm:$0xff]  }
 0x196   :  { %v693_v3 = vrot.slane %v607_v15, 4  ;;  %v608_v17 = vmul.f32 %v1830_v25, %v591_v18  ;;  %v762_v11 = vsel %vm741_vm12, %v680_v9, %v761_v20  ;;  %v777_v27 = vsel %vm739_vm11, %v715_v21, %v776_v56  ;;  %v1465_v18 = vld [vmem:[%s2015_s4 + $0x98] sm:$0xff]   ;;  %v1466_v20 = vld [vmem:[%s2015_s4 + $0xe0] sm:$0xff]  }
 0x197   :  { %v716_v28 = vand.u32 2147483647, %v708_v2  ;;  %v685_v29 = vrot.slane %v684_v26, 1  ;;  %v690_v31 = vmax.f32 %v688_v13, %v689_v22  ;;  %v794_v4 = vsel %vm741_vm12, %v724_v24, %v793_v30  ;;  %v1463_v13 = vld [vmem:[%s2015_s4 + $0x90] sm:$0xff]   ;;  %v1467_v21 = vld [vmem:[%s2015_s4 + $0xa0] sm:$0xff]   ;;  %v1468_v2 = vld [vmem:[%s2015_s4 + $0xe8] sm:$0xff]  }
 0x198   :  { %v694_v14 = vmax.f32 %v607_v15, %v693_v3  ;;  %v699_v32 = vrot.slane %v608_v17, 4  ;;  %v800_v1 = vpack.c.bf16 %v1885_v6, %v1885_v6  ;;  %v1464_v15 = vld [vmem:[%s2015_s4 + $0xd8] sm:$0xff]   ;;  %v1469_v24 = vld [vmem:[%s2015_s4 + $0xa8] sm:$0xff]   ;;  %v1471_v22 = vld [vmem:[%s2015_s4 + $0xb0] sm:$0xff]  }
 0x199   :  { %v686_v33 = vmax.f32 %v684_v26, %v685_v29  ;;  %v778_v23 = vsel %vm741_vm12, %v716_v28, %v777_v27  ;;  %v691_v34 = vrot.slane %v690_v31, 1  ;;  %v1470_v26 = vld [vmem:[%s2015_s4 + $0xf0] sm:$0xff]   ;;  %v1472_v3 = vld [vmem:[%s2015_s4 + $0xf8] sm:$0xff]   ;;  %v1492_v27 = vmov 0.0   ;;  %v1474_v28 = vld [vmem:[%s2018_s6] sm:$0xff]  }
 0x19a   :  { %v695_v36 = vrot.slane %v694_v14, 2  ;;  %v700_v37 = vmax.f32 %v608_v17, %v699_v32  ;;  %v1473_v17 = vld [vmem:[%s2015_s4 + $0xb8] sm:$0xff]   ;;  %v1475_v29 = vld [vmem:[%s2018_s6 + $0x8] sm:$0xff]   ;;  %v1476_v30 = vld [vmem:[%s2018_s6 + $0x10] sm:$0xff]  }
 0x19b   :  { %v709_v25 = vsub.f32 %v1863_v40, %v686_v33  ;;  %v725_v38 = vmul.f32 %v686_v33, %v1863_v40  ;;  %v763_v39 = vsel %vm743_vm13, %v686_v33, %v762_v11  ;;  %v692_v19 = vmax.f32 %v690_v31, %v691_v34  ;;  %v1477_v31 = vld [vmem:[%s2018_s6 + $0x18] sm:$0xff]   ;;  %v1479_v32 = vld [vmem:[%s2018_s6 + $0x28] sm:$0xff]  }
 0x19c   :  { %v696_v41 = vmax.f32 %v694_v14, %v695_v36  ;;  %v701_v0 = vrot.slane %v700_v37, 2  ;;  %v1478_v14 = vld [vmem:[%s2018_s6 + $0x20] sm:$0xff]   ;;  %v1481_v33 = vld [vmem:[%s2018_s6 + $0x38] sm:$0xff]  }
 0x19d   :  { %v717_v43 = vand.u32 2147483647, %v709_v25  ;;  %v795_v44 = vsel %vm743_vm13, %v725_v38, %v794_v4  ;;  %v710_v46 = vsub.f32 %v1865_v42, %v692_v19  ;;  %v764_v48 = vsel %vm745_vm14, %v692_v19, %v763_v39  ;;  %v1480_v4 = vld [vmem:[%s2018_s6 + $0x30] sm:$0xff]   ;;  %v1302_v38 = vld [vmem:[%s2019_s5] ss:$0 sm:$0xff] }
 0x19e   :  { %v697_v47 = vrot.slane %v696_v41, 1  ;;  %v702_v35 = vmax.f32 %v700_v37, %v701_v0  ;;  %v726_v53 = vmul.f32 %v692_v19, %v1865_v42 }
 0x19f   :  { %v779_v49 = vsel %vm743_vm13, %v717_v43, %v778_v23  ;;  %v718_v50 = vand.u32 2147483647, %v710_v46 }
 0x1a0   :  { %v698_v40 = vmax.f32 %v696_v41, %v697_v47  ;;  %v703_v51 = vrot.slane %v702_v35, 1  ;;  %v796_v52 = vsel %vm745_vm14, %v726_v53, %v795_v44 }
 0x1a1   :  { %v780_v57 = vsel %vm745_vm14, %v718_v50, %v779_v49 }
 0x1a2   :  { %v704_v45 = vmax.f32 %v702_v35, %v703_v51  ;;  %v711_v54 = vsub.f32 %v1874_v59, %v698_v40  ;;  %v765_v56 = vsel %vm747_vm15, %v698_v40, %v764_v48  ;;  %v727_v55 = vmul.f32 %v698_v40, %v1874_v59  ;;  %v1335_v48 = vld [vmem:[%s2020_s7] ss:$0 sm:$0xff] }
 0x1a4   :  { %v719_v58 = vand.u32 2147483647, %v711_v54  ;;  %v766_v61 = vsel %vm749_vm0, %v704_v45, %v765_v56  ;;  %v728_v42 = vmul.f32 %v704_v45, %v1878_v12  ;;  %v797_v60 = vsel %vm747_vm15, %v727_v55, %v796_v52 }
 0x1a5   :  { %v801_v62 = vpack.c.bf16 %v766_v61, %v766_v61  ;;  %v712_v16 = vsub.f32 %v1878_v12, %v704_v45  ;;  %v1461_v12 = vld [vmem:[%s2015_s4 + $0x88] sm:$0xff]  }
 0x1a6   :  { %v798_v59 = vsel %vm749_vm0, %v728_v42, %v797_v60  ;;  %v781_v7 = vsel %vm747_vm15, %v719_v58, %v780_v57 }
 0x1a7   :  { %1099 = vmatprep.mubr.bf16.mxu1 %v801_v62  ;;  %v803_v8 = vpack.c.bf16 %v798_v59, %v798_v59  ;;  %v720_v9 = vand.u32 2147483647, %v712_v16 }
 0x1a8   :  { %1100 = vmatmul.mubr.bf16.vlgmr.msra.gmra.mrb[0].mxu1 %v800_v1 }
 0x1a9   :  { %1367 = vmatpush3.bf16.msra.mxu1 %v1459_v63  ;;  %1139 = vmatprep.mubr.bf16.mxu1 %v803_v8  ;;  %v782_v6 = vsel %vm749_vm0, %v720_v9, %v781_v7 }
 0x1aa   :  { %1368 = vmatprep.subr.bf16.mxu1 %v1460_v5  ;;  %v802_v11 = vpack.c.bf16 %v782_v6, %v782_v6 }
 0x1ad   :  { %1369 = vmatpush3.bf16.msra.mxu1 %v1461_v12 }
 0x1ae   :  { %1370 = vmatprep.subr.bf16.mxu1 %v1462_v10 }
 0x1b1   :  { %1371 = vmatpush3.bf16.msra.mxu1 %v1463_v13 }
 0x1b2   :  { %1372 = vmatprep.subr.bf16.mxu1 %v1464_v15 }
 0x1b5   :  { %1373 = vmatpush3.bf16.msra.mxu1 %v1465_v18 }
 0x1b6   :  { %1374 = vmatprep.subr.bf16.mxu1 %v1466_v20 }
 0x1b9   :  { %1375 = vmatpush3.bf16.msra.mxu1 %v1467_v21 }
 0x1ba   :  { %1376 = vmatprep.subr.bf16.mxu1 %v1468_v2 }
 0x1bd   :  { %1377 = vmatpush3.bf16.msra.mxu1 %v1469_v24 }
 0x1be   :  { %1378 = vmatprep.subr.bf16.mxu1 %v1470_v26 }
 0x1c1   :  { %1379 = vmatpush3.bf16.msra.mxu1 %v1471_v22 }
 0x1c2   :  { %1380 = vmatprep.subr.bf16.mxu1 %v1472_v3 }
 0x1c5   :  { %1381 = vmatpush3.bf16.msra.mxu1 %v1473_v17 }
 0x1c6   :  { %1397 = vmatprep.subr.bf16.mxu1 %v1492_v27 }
 0x1c8   :  { %1140 = vmatmul.mubr.bf16.vlgmr.msra.gmra.mrb[4].mxu1 %v802_v11 }
 0x1c9   :  { %1398 = vmatpush3.bf16.msra.mxu1 %v1474_v28  ;;  %1413 = vmatprep.mubr.msk.bf16.mxu1 %vm1493_vm1, %v1492_v27 }
 0x1ca   :  { %1399 = vmatprep.subr.bf16.mxu1 %v1492_v27 }
 0x1cd   :  { %1400 = vmatpush3.bf16.msra.mxu1 %v1475_v29 }
 0x1ce   :  { %1401 = vmatprep.subr.bf16.mxu1 %v1492_v27 }
 0x1d1   :  { %1402 = vmatpush3.bf16.msra.mxu1 %v1476_v30 }
 0x1d2   :  { %1403 = vmatprep.subr.bf16.mxu1 %v1492_v27 }
 0x1d5   :  { %1404 = vmatpush3.bf16.msra.mxu1 %v1477_v31 }
 0x1d6   :  { %1405 = vmatprep.subr.bf16.mxu1 %v1492_v27 }
 0x1d9   :  { %1406 = vmatpush3.bf16.msra.mxu1 %v1478_v14 }
 0x1da   :  { %1407 = vmatprep.subr.bf16.mxu1 %v1492_v27 }
 0x1dd   :  { %1408 = vmatpush3.bf16.msra.mxu1 %v1479_v32 }
 0x1de   :  { %1409 = vmatprep.subr.bf16.mxu1 %v1492_v27 }
 0x1e1   :  { %1410 = vmatpush3.bf16.msra.mxu1 %v1480_v4 }
 0x1e2   :  { %1411 = vmatprep.subr.bf16.mxu1 %v1492_v27 }
 0x1e5   :  { %1412 = vmatpush3.bf16.msra.mxu1 %v1481_v33 }
 0x27b   :  { %v1360_v23 = vpop.f32.mrb[0].mxu1 }
 0x27c   :  { %v1361_v34 = vpop.f32.mrb[1].mxu1 }
 0x27d   :  { %v1362_v36 = vadd.f32 %v1361_v34, %v1360_v23  ;;  %v1363_v37 = vpop.f32.mrb[2].mxu1 }
 0x27e   :  { %v1364_v25 = vpop.f32.mrb[3].mxu1 }
 0x27f   :  { %v1102_v41 = vadd.f32 %v1362_v36, %v1302_v38 }
 0x29b   :  { %v1382_v39 = vpop.f32.mrb[4].mxu1 }
 0x29c   :  { %v1383_v19 = vpop.f32.mrb[5].mxu1 }
 0x29d   :  { %v1384_v0 = vadd.f32 %v1383_v19, %v1382_v39  ;;  %v1385_v43 = vpop.f32.mrb[6].mxu1 }
 0x29e   :  { %v1386_v44 = vpop.f32.mrb[7].mxu1 }
 0x29f   :  { %v1142_v46 = vadd.f32 %v1384_v0, %v1102_v41 }
 0x2a1   :  { %1482 = vtanh.f32 %v1142_v46 }
 0x2ab   :  { %v1483_v47 = vpop.eup %1482 }
 0x2ac   :  { %v1148_v35 = vpack.c.bf16 %v1483_v47, %v1483_v47 }
 0x2ae   :  { %1414 = vmatmul.mubr.bf16.vlgmr.msra.gmra.mrb[8].mxu1 %v1148_v35 }
 0x381   :  { %v1254_v53 = vpop.f32.mrb[8].mxu1 }
 0x382   :  { %v1255_v49 = vadd.f32 %v1335_v48, %v1254_v53  ;;  %v1415_v50 = vpop.f32.mrb[9].mxu1 }
 0x383   :  { %v1257_v40 = vpop.f32.mrb[10].mxu1 }
 0x384   :  { %1260 = vmax.xlane.f32.xlu0 %v1255_v49  ;;  %v1416_v51 = vpop.f32.mrb[11].mxu1 }
 0x411   :  { %v1261_v52 = vpop.xlane.xlu0 %1260 }
 0x412   :  { %v1262_v45 = vsub.f32 %v1255_v49, %v1261_v52 }
 0x414   :  { %v1263_v54 = vmul.f32 1.442695, %v1262_v45 }
 0x416   :  { %1484 = vpow2.f32 %v1263_v54 }
 0x420   :  { %v1485_v56 = vpop.eup %1484 }
 0x421   :  { %1265 = vadd.xlane.f32.xlu1 %v1485_v56 }
 0x4ae   :  { %v1266_v55 = vpop.xlane.xlu1 %1265 }
 0x4af   :  { %1486 = vrcp.f32 %v1266_v55 }
 0x4b9   :  { %v1487_v57 = vpop.eup %1486 }
 0x4ba   :  { %v1268_v58 = vmul.f32 %v1487_v57, %v1485_v56 }
 0x4bc   :  { %1269 = vst [vmem:[%s2021_s8] sm:$0xff] %v1268_v58 }

</bundles_post_ra>
